<compile_context>
chip_gen: v6e
topology: v6e:2x2x1
jax: 0.10.0
libtpu: 0.0.40
codegen_flags: <defaults>
</compile_context>

<pallas_src>
from functools import partial, reduce

import numpy as np
import jax
import jax.numpy as jnp
from jax.experimental import pallas as pl
from jax.experimental.pallas import tpu as pltpu


def _ceil_div(a, b):
    return -(-a // b)


def _round_up(a, b):
    return _ceil_div(a, b) * b


def dndt_kernel(x_ref, wb_ref, et_ref, score_t_ref, out_ref, *, n_feat, k_max):
    """One batch tile of the DNDT forward pass.

    x_ref:       [F+1, TN]   features on sublanes, batch on lanes; last row == 1.0
    wb_ref:      [F*K, F+1]  per-(feature,bin) slopes, bias in the last column,
                             1/temperature folded in, padded bins biased to -1e30
    et_ref:      [L, F*K]    0/1 digit-expansion matrix (bf16): leaf l selects bin
                             digit_d(l) of feature d
    score_t_ref: [C, L]      leaf_score^T (bf16)
    out_ref:     [C, TN]     f32 logits, batch on lanes
    """
    # All soft-bin logits in a single MXU matmul (kept f32: the folded 1/temperature
    # amplifies operand quantisation, so h must stay accurate).
    h = jnp.dot(wb_ref[...], x_ref[...],
                preferred_element_type=jnp.float32)                 # [F*K, TN]

    # Segmented (per-feature) stable log-softmax over each K-row block of the slab.
    logps = []
    for d in range(n_feat):                  # static unroll; F is small
        hd = h[d * k_max:(d + 1) * k_max, :]                        # [K, TN]
        m = jnp.max(hd, axis=0, keepdims=True)                      # [1, TN]
        z = jnp.exp(hd - m)                                         # EUP slab
        logps.append((hd - m) - jnp.log(jnp.sum(z, axis=0, keepdims=True)))
    logp = jnp.concatenate(logps, axis=0)                           # [F*K, TN]

    # Fused Kronecker product in log space: ONE matmul + ONE exp replaces the F
    # per-feature Et matmuls and the F-1 elementwise [L, TN] products.
    leaf = jnp.exp(jnp.dot(et_ref[...], logp.astype(et_ref.dtype),
                           preferred_element_type=jnp.float32))     # [L, TN], f32

    out_ref[...] = jnp.dot(score_t_ref[...], leaf.astype(score_t_ref.dtype),
                           preferred_element_type=jnp.float32)      # [C, TN]


def dndt_forward(x, cut_points_list, leaf_score, temperature, *,
                 tile_n=4096, matmul_dtype=jnp.bfloat16):
    x = jnp.asarray(x, jnp.float32)
    N, F = x.shape
    Ks = [int(np.asarray(cp).shape[0]) + 1 for cp in cut_points_list]
    assert len(Ks) == F
    Kmax = max(Ks)
    FK = F * Kmax
    L = int(np.prod(Ks))
    C = int(leaf_score.shape[1])
    assert int(leaf_score.shape[0]) == L

    inv_t = 1.0 / float(temperature)

    # WB[f*Kmax+k, :F] = soft-bin slope of bin k of feature f (only column f non-zero)
    # WB[f*Kmax+k,  F] = bin bias (applied through the appended ones-row of x_aug)
    # 1/temperature folded in; padded bins get a finite -1e30 bias -> softmax prob 0.
    # (The -1e30 is written directly, NOT scaled by 1/temperature, so it can never
    #  be pushed to -inf by a large inverse temperature.)
    WB = np.zeros((FK, F + 1), np.float32)
    for d, (cp, Kd) in enumerate(zip(cut_points_list, Ks)):
        w = np.linspace(1.0, float(Kd), Kd, dtype=np.float32)       # [1, 2, ..., Kd]
        cps = np.sort(np.asarray(cp, np.float32))
        b = np.cumsum(np.concatenate([np.zeros((1,), np.float32), -cps]))
        WB[d * Kmax:d * Kmax + Kd, d] = w * inv_t
        WB[d * Kmax:d * Kmax + Kd, F] = b * inv_t
        WB[d * Kmax + Kd:(d + 1) * Kmax, F] = -1e30    # finite: 0 * (-1e30) == 0
    WB = jnp.asarray(WB)

    # One-hot digit expansion: Et[l, d*Kmax + j] = 1 iff mixed-radix digit d of leaf
    # index l equals j (feature 0 is the slowest digit -> matches reduce(kron_prod)).
    strides = [int(np.prod(Ks[d + 1:], dtype=np.int64)) for d in range(F)]
    Et = np.zeros((L, FK), np.float32)
    for l in range(L):
        for d in range(F):
            Et[l, d * Kmax + (l // strides[d]) % Ks[d]] = 1.0
    Et = jnp.asarray(Et, matmul_dtype)                               # 0/1 -> lossless

    score_t = jnp.asarray(leaf_score, jnp.float32).T.astype(matmul_dtype)  # [C, L]

    # --- adaptive batch tiling (batch on the lane axis) ----------------------
    n_lane = _round_up(max(N, 1), 128)
    num_tiles = _ceil_div(n_lane, int(tile_n))
    # Keep >= 2 grid steps when the batch is big enough so the "parallel" axis can
    # actually be split across both TensorCores on megacore parts (v7x).
    if num_tiles == 1 and n_lane >= 1024:
        num_tiles = 2
    TN = _round_up(_ceil_div(n_lane, num_tiles), 128)
    N_pad = TN * num_tiles

    # Batch on the lane axis; appended ones-row carries the bias through the matmul.
    x_aug = jnp.concatenate([x.T, jnp.ones((1, N), jnp.float32)], axis=0)   # [F+1, N]
    x_aug = jnp.pad(x_aug, ((0, 0), (0, N_pad - N)))                        # [F+1, N_pad]

    cost = pl.CostEstimate(
        flops=2 * N_pad * (FK * (F + 1) + L * FK + C * L),
        transcendentals=N_pad * (FK + F + L),
        bytes_accessed=4 * N_pad * (F + 1 + C) + 4 * FK * (F + 1)
                       + 2 * (L * FK + C * L),
    )

    out_t = pl.pallas_call(
        partial(dndt_kernel, n_feat=F, k_max=Kmax),
        out_shape=jax.ShapeDtypeStruct((C, N_pad), jnp.float32),
        grid=(num_tiles,),
        in_specs=[
            pl.BlockSpec((F + 1, TN), lambda i: (0, i)),     # x_aug (tiled over batch)
            pl.BlockSpec((FK, F + 1), lambda i: (0, 0)),     # WB
            pl.BlockSpec((L, FK), lambda i: (0, 0)),         # Et
            pl.BlockSpec((C, L), lambda i: (0, 0)),          # leaf_score^T
        ],
        out_specs=pl.BlockSpec((C, TN), lambda i: (0, i)),
        compiler_params=pltpu.CompilerParams(
            dimension_semantics=("parallel",)),
        cost_estimate=cost,
    )(x_aug, WB, Et, score_t)

    return out_t[:, :N].T                                            # [N, C]


def dndt_reference(x, cut_points_list, leaf_score, temperature):
    """Pure-JAX port of the PyTorch forward (torch_bin + kron-prod + matmul)."""
    def torch_bin(xcol, cp):
        D = cp.shape[0]
        Wd = jnp.linspace(1.0, D + 1.0, D + 1)[None, :]
        cps = jnp.sort(cp)
        b = jnp.cumsum(jnp.concatenate([jnp.zeros((1,), cp.dtype), -cps]))
        h = xcol @ Wd + b
        return jax.nn.softmax(h / temperature, axis=1)

    def kron_prod(a, b):
        res = jnp.einsum('ij,ik->ijk', a, b)
        return res.reshape(res.shape[0], -1)

    feats = [torch_bin(x[:, d:d + 1], cp) for d, cp in enumerate(cut_points_list)]
    leaf = reduce(kron_prod, feats)
    return leaf @ leaf_score


if __name__ == "__main__":
    # Small DNDT: 4 features, 2 cuts each -> 3 bins/feature, 81 leaves, 4 classes.
    num_cut = [2, 2, 2, 2]
    num_class = 4
    temperature = 0.1
    N = 100
    F = len(num_cut)

    key = jax.random.PRNGKey(0)
    keys = jax.random.split(key, F + 2)
    cut_points_list = [jax.random.uniform(keys[d], (num_cut[d],), jnp.float32)
                       for d in range(F)]
    num_leaf = int(np.prod(np.array(num_cut) + 1))
    leaf_score = jax.random.uniform(keys[F], (num_leaf, num_class), jnp.float32)
    x = jax.random.uniform(keys[F + 1], (N, F), jnp.float32)

    out = dndt_forward(x, cut_points_list, leaf_score, temperature)
    out = jax.block_until_ready(out)

    ref = dndt_reference(x, cut_points_list, leaf_score, temperature)
    # bf16 MXU operands (Et/logp and leaf/leaf_score^T) cost ~1e-2 relative error;
    # all accumulation and elementwise math stay f32.
    np.testing.assert_allclose(np.asarray(out), np.asarray(ref), rtol=2e-2, atol=2e-3)

    print("KERNEL_OK")
</pallas_src>

<mosaic_0001>
module attributes {stable_mosaic.version = 11 : i64} {
  func.func @dndt_kernel(%arg0: i32, %arg1: memref<5x128xf32, #tpu.memory_space<vmem>>, %arg2: memref<12x5xf32, #tpu.memory_space<vmem>>, %arg3: memref<81x12xbf16, #tpu.memory_space<vmem>>, %arg4: memref<4x81xbf16, #tpu.memory_space<vmem>>, %arg5: memref<4x128xf32, #tpu.memory_space<vmem>>) attributes {dimension_semantics = [#tpu.dimension_semantics<parallel>], iteration_bounds = array<i64: 1>, scalar_prefetch = 0 : i64, scratch_operands = 0 : i64, tpu.core_type = #tpu.core_type<tc>, window_params = [{transform_indices = @transform_0, window_bounds = array<i64: 5, 128>}, {pipeline_mode = #tpu.pipeline_mode<synchronous>, transform_indices = @transform_1, window_bounds = array<i64: 12, 5>}, {pipeline_mode = #tpu.pipeline_mode<synchronous>, transform_indices = @transform_2, window_bounds = array<i64: 81, 12>}, {pipeline_mode = #tpu.pipeline_mode<synchronous>, transform_indices = @transform_3, window_bounds = array<i64: 4, 81>}, {transform_indices = @transform_4, window_bounds = array<i64: 4, 128>}]} {
    %c0 = arith.constant 0 : index
    %c0_0 = arith.constant 0 : index
    %0 = vector.load %arg2[%c0, %c0_0] : memref<12x5xf32, #tpu.memory_space<vmem>>, vector<12x5xf32>
    %c0_1 = arith.constant 0 : index
    %c0_2 = arith.constant 0 : index
    %1 = vector.load %arg1[%c0_1, %c0_2] : memref<5x128xf32, #tpu.memory_space<vmem>>, vector<5x128xf32>
    %cst = arith.constant dense<0.000000e+00> : vector<12x128xf32>
    %2 = tpu.matmul %0, %1, %cst {dimension_numbers = #tpu.dot_dimension_numbers<[1], [0], [0], [1], [0, 0, 1, 1], [], []>} : vector<12x5xf32>, vector<5x128xf32>, vector<12x128xf32> -> vector<12x128xf32>
    %3 = vector.extract_strided_slice %2 {offsets = [0, 0], sizes = [3, 128], strides = [1, 1]} : vector<12x128xf32> to vector<3x128xf32>
    %cst_3 = arith.constant dense<0xFF800000> : vector<128xf32>
    %4 = vector.multi_reduction <maximumf>, %3, %cst_3 [0] : vector<3x128xf32> to vector<128xf32>
    %5 = vector.shape_cast %4 : vector<128xf32> to vector<1x128xf32>
    %6 = vector.broadcast %5 : vector<1x128xf32> to vector<3x128xf32>
    %7 = arith.subf %3, %6 : vector<3x128xf32>
    %8 = math.exp %7 : vector<3x128xf32>
    %9 = vector.broadcast %5 : vector<1x128xf32> to vector<3x128xf32>
    %10 = arith.subf %3, %9 : vector<3x128xf32>
    %cst_4 = arith.constant dense<0.000000e+00> : vector<128xf32>
    %11 = vector.multi_reduction <add>, %8, %cst_4 [0] : vector<3x128xf32> to vector<128xf32>
    %12 = vector.shape_cast %11 : vector<128xf32> to vector<1x128xf32>
    %13 = math.log %12 : vector<1x128xf32>
    %14 = vector.broadcast %13 : vector<1x128xf32> to vector<3x128xf32>
    %15 = arith.subf %10, %14 : vector<3x128xf32>
    %16 = vector.extract_strided_slice %2 {offsets = [3, 0], sizes = [3, 128], strides = [1, 1]} : vector<12x128xf32> to vector<3x128xf32>
    %cst_5 = arith.constant dense<0xFF800000> : vector<128xf32>
    %17 = vector.multi_reduction <maximumf>, %16, %cst_5 [0] : vector<3x128xf32> to vector<128xf32>
    %18 = vector.shape_cast %17 : vector<128xf32> to vector<1x128xf32>
    %19 = vector.broadcast %18 : vector<1x128xf32> to vector<3x128xf32>
    %20 = arith.subf %16, %19 : vector<3x128xf32>
    %21 = math.exp %20 : vector<3x128xf32>
    %22 = vector.broadcast %18 : vector<1x128xf32> to vector<3x128xf32>
    %23 = arith.subf %16, %22 : vector<3x128xf32>
    %cst_6 = arith.constant dense<0.000000e+00> : vector<128xf32>
    %24 = vector.multi_reduction <add>, %21, %cst_6 [0] : vector<3x128xf32> to vector<128xf32>
    %25 = vector.shape_cast %24 : vector<128xf32> to vector<1x128xf32>
    %26 = math.log %25 : vector<1x128xf32>
    %27 = vector.broadcast %26 : vector<1x128xf32> to vector<3x128xf32>
    %28 = arith.subf %23, %27 : vector<3x128xf32>
    %29 = vector.extract_strided_slice %2 {offsets = [6, 0], sizes = [3, 128], strides = [1, 1]} : vector<12x128xf32> to vector<3x128xf32>
    %cst_7 = arith.constant dense<0xFF800000> : vector<128xf32>
    %30 = vector.multi_reduction <maximumf>, %29, %cst_7 [0] : vector<3x128xf32> to vector<128xf32>
    %31 = vector.shape_cast %30 : vector<128xf32> to vector<1x128xf32>
    %32 = vector.broadcast %31 : vector<1x128xf32> to vector<3x128xf32>
    %33 = arith.subf %29, %32 : vector<3x128xf32>
    %34 = math.exp %33 : vector<3x128xf32>
    %35 = vector.broadcast %31 : vector<1x128xf32> to vector<3x128xf32>
    %36 = arith.subf %29, %35 : vector<3x128xf32>
    %cst_8 = arith.constant dense<0.000000e+00> : vector<128xf32>
    %37 = vector.multi_reduction <add>, %34, %cst_8 [0] : vector<3x128xf32> to vector<128xf32>
    %38 = vector.shape_cast %37 : vector<128xf32> to vector<1x128xf32>
    %39 = math.log %38 : vector<1x128xf32>
    %40 = vector.broadcast %39 : vector<1x128xf32> to vector<3x128xf32>
    %41 = arith.subf %36, %40 : vector<3x128xf32>
    %42 = vector.extract_strided_slice %2 {offsets = [9, 0], sizes = [3, 128], strides = [1, 1]} : vector<12x128xf32> to vector<3x128xf32>
    %cst_9 = arith.constant dense<0xFF800000> : vector<128xf32>
    %43 = vector.multi_reduction <maximumf>, %42, %cst_9 [0] : vector<3x128xf32> to vector<128xf32>
    %44 = vector.shape_cast %43 : vector<128xf32> to vector<1x128xf32>
    %45 = vector.broadcast %44 : vector<1x128xf32> to vector<3x128xf32>
    %46 = arith.subf %42, %45 : vector<3x128xf32>
    %47 = math.exp %46 : vector<3x128xf32>
    %48 = vector.broadcast %44 : vector<1x128xf32> to vector<3x128xf32>
    %49 = arith.subf %42, %48 : vector<3x128xf32>
    %cst_10 = arith.constant dense<0.000000e+00> : vector<128xf32>
    %50 = vector.multi_reduction <add>, %47, %cst_10 [0] : vector<3x128xf32> to vector<128xf32>
    %51 = vector.shape_cast %50 : vector<128xf32> to vector<1x128xf32>
    %52 = math.log %51 : vector<1x128xf32>
    %53 = vector.broadcast %52 : vector<1x128xf32> to vector<3x128xf32>
    %54 = arith.subf %49, %53 : vector<3x128xf32>
    %55 = tpu.concatenate %15, %28, %41, %54 in 0 : vector<3x128xf32>, vector<3x128xf32>, vector<3x128xf32>, vector<3x128xf32> -> vector<12x128xf32>
    %c0_11 = arith.constant 0 : index
    %c0_12 = arith.constant 0 : index
    %56 = vector.load %arg3[%c0_11, %c0_12] : memref<81x12xbf16, #tpu.memory_space<vmem>>, vector<81x12xbf16>
    %57 = arith.truncf %55 : vector<12x128xf32> to vector<12x128xbf16>
    %cst_13 = arith.constant dense<0.000000e+00> : vector<81x128xf32>
    %58 = tpu.matmul %56, %57, %cst_13 {dimension_numbers = #tpu.dot_dimension_numbers<[1], [0], [0], [1], [0, 0, 1, 1], [], []>} : vector<81x12xbf16>, vector<12x128xbf16>, vector<81x128xf32> -> vector<81x128xf32>
    %59 = math.exp %58 : vector<81x128xf32>
    %c0_14 = arith.constant 0 : index
    %c0_15 = arith.constant 0 : index
    %60 = vector.load %arg4[%c0_14, %c0_15] : memref<4x81xbf16, #tpu.memory_space<vmem>>, vector<4x81xbf16>
    %61 = arith.truncf %59 : vector<81x128xf32> to vector<81x128xbf16>
    %cst_16 = arith.constant dense<0.000000e+00> : vector<4x128xf32>
    %62 = tpu.matmul %60, %61, %cst_16 {dimension_numbers = #tpu.dot_dimension_numbers<[1], [0], [0], [1], [0, 0, 1, 1], [], []>} : vector<4x81xbf16>, vector<81x128xbf16>, vector<4x128xf32> -> vector<4x128xf32>
    %c0_17 = arith.constant 0 : index
    %c0_18 = arith.constant 0 : index
    %63 = vector.load %arg5[%c0_17, %c0_18] : memref<4x128xf32, #tpu.memory_space<vmem>>, vector<4x128xf32>
    tpu.vector_store %arg5[%c0_17, %c0_18], %62 {strides = array<i32>} : memref<4x128xf32, #tpu.memory_space<vmem>>, vector<4x128xf32>,
    return
  }
  func.func @transform_0(%arg0: i32) -> (i32, i32) {
    %c0_i32 = arith.constant 0 : i32
    %c0_i32_0 = arith.constant 0 : i32
    return %c0_i32, %arg0 : i32, i32
  }
  func.func @transform_1(%arg0: i32) -> (i32, i32) {
    %c0_i32 = arith.constant 0 : i32
    %c0_i32_0 = arith.constant 0 : i32
    %c0_i32_1 = arith.constant 0 : i32
    return %c0_i32, %c0_i32_0 : i32, i32
  }
  func.func @transform_2(%arg0: i32) -> (i32, i32) {
    %c0_i32 = arith.constant 0 : i32
    %c0_i32_0 = arith.constant 0 : i32
    %c0_i32_1 = arith.constant 0 : i32
    return %c0_i32, %c0_i32_0 : i32, i32
  }
  func.func @transform_3(%arg0: i32) -> (i32, i32) {
    %c0_i32 = arith.constant 0 : i32
    %c0_i32_0 = arith.constant 0 : i32
    %c0_i32_1 = arith.constant 0 : i32
    return %c0_i32, %c0_i32_0 : i32, i32
  }
  func.func @transform_4(%arg0: i32) -> (i32, i32) {
    %c0_i32 = arith.constant 0 : i32
    %c0_i32_0 = arith.constant 0 : i32
    return %c0_i32, %arg0 : i32, i32
  }
}

</mosaic_0001>

<bundles_post_ra>
// kernel: tpu_custom_call.1
= control target key start
LH: loop header
LB: loop body
LE: loop exit
PB: predicated region body
PF: predicated region fallthrough
CT: control target
= control target key end

     0   :  { %vm29_vm0 = vcmask 1044480   ;;  %vm22_vm1 = vcmask 39936   ;;  %s696_s0 = inlined_call_operand.vmem [shape: f32[5,128], index: 0, kind: input, shape index: {}]   ;;  %s697_s1 = inlined_call_operand.vmem [shape: f32[12,5], index: 1, kind: input, shape index: {}]   ;;  %s698_s2 = inlined_call_operand.vmem [shape: bf16[81,12], index: 2, kind: input, shape index: {}]   ;;  %s699_s3 = inlined_call_operand.vmem [shape: bf16[4,81], index: 3, kind: input, shape index: {}]   ;;  %s700_s4 = inlined_call_operand.hbm [shape: f32[4,128], index: 4, kind: output, shape index: {}]  }
   0x1   :  { %v21_v0 = vld [vmem:[%s696_s0] sm:$0x1f]  ;;  %v20_v2 = vld [vmem:[%s697_s1 + $0x8] sm:$0xf] }
   0x2   :  { %v19_v1 = vld [vmem:[%s697_s1] sm:$0xff]  ;;  %484 = vmatprep.subr.msk.mxu1 %vm29_vm0, %v21_v0 }
   0x3   :  { %486 = vmatprep.mubr.msk.f32.mxu1 %vm22_vm1, %v19_v1  ;;  %485 = vmatpush3.msk.msra.mxu1 %vm29_vm0, %v21_v0 }
   0x4   :  { %487 = vmatmul.mubr.msk.f32.vlgmr.msra.gmra.mxu1 %vm22_vm1, %v20_v2 }
   0x5   :  { %9 = vsyncpa [#allocation3], 0  ;;  %v524_v3 = vld [vmem:[%s698_s2] sm:$0xff]   ;;  %vm256_vm2 = vcmask 97280   ;;  %vm188_vm3 = vcmask 1043457   ;;  %vm108_vm4 = vcmask 1042432  }
   0x6   :  { %491 = vmatprep.mubr.msk.bf16.mxu1 %vm256_vm2, %v524_v3  ;;  %vm155_vm5 = vcmask 1040384   ;;  %vm129_vm6 = vcmask 1045507   ;;  %vm153_vm7 = vcmask 1047558   ;;  %vm172_vm8 = vcmask 1041408   ;;  %s595_s6 = smov [#allocation2]  }
   0x7   :  { %vm213_vm9 = vcmask 1045504   ;;  %vm593_vm10 = vmmov 0   ;;  %vm387_vm11 = vcmask 662528   ;;  %s443_s7 = sshll.u32 %s595_s6, 4  ;;  %s444_s7 = int_to_ptr.vmem [resolvable:$true] %s443_s7 }
   0x8   :  { %s570_s8 = scalar_lea.vmem %s444_s7, 64  ;;  %p575_p1 = scmp.lt.s32.totalorder %s444_s7, %s444_s7 }
   0x9   :  { %p571_p0 = scmp.ne.s32.totalorder %s444_s7, %s570_s8  ;;  %p576_p2 = scmp.lt.s32.totalorder %s570_s8, %s570_s8 }
   0xb   :  { %p577_p3 = por %p576_p2, %p575_p1 }
   0xd   :  { %p578_p4 = pnand %p577_p3, %p571_p0 }
  0xc4   :  { %v488_v4 = vpop.f32.mrf.mxu1 }
  0xc5   :  { %v189_v5 = vsel %vm188_vm3, %v488_v4, -inf  ;;  %v156_v8 = vsel %vm155_vm5, %v488_v4, -inf }
  0xc6   :  { %v190_v6 = vrot.slane %v189_v5, 4  ;;  %v99_v7 = vpop.f32.mrf.mxu1 }
  0xc7   :  { %v109_v9 = vsel %vm108_vm4, %v99_v7, -inf  ;;  %v130_v10 = vsel %vm129_vm6, %v99_v7, -inf  ;;  %v154_v11 = vsel %vm153_vm7, %v99_v7, -inf }
  0xc8   :  { %v191_v12 = vmax.f32 %v189_v5, %v190_v6  ;;  %v110_v13 = vrot.slane %v109_v9, 4  ;;  %v131_v14 = vrot.slane %v130_v10, 4  ;;  %v157_v15 = vmax.f32 %v154_v11, %v156_v8 }
  0xca   :  { %v192_v16 = vrot.slane %v191_v12, 2  ;;  %v111_v17 = vmax.f32 %v109_v9, %v110_v13  ;;  %v132_v18 = vmax.f32 %v130_v10, %v131_v14  ;;  %v158_v19 = vrot.slane %v157_v15, 4 }
  0xcc   :  { %v193_v20 = vmax.f32 %v191_v12, %v192_v16  ;;  %v112_v21 = vrot.slane %v111_v17, 2  ;;  %v133_v22 = vrot.slane %v132_v18, 2  ;;  %v159_v23 = vmax.f32 %v157_v15, %v158_v19 }
  0xce   :  { %v194_v24 = vrot.slane %v193_v20, 1  ;;  %v113_v25 = vmax.f32 %v111_v17, %v112_v21  ;;  %v134_v26 = vmax.f32 %v132_v18, %v133_v22  ;;  %v160_v27 = vrot.slane %v159_v23, 2 }
  0xd0   :  { %v195_v28 = vmax.f32 %v193_v20, %v194_v24  ;;  %v114_v29 = vrot.slane %v113_v25, 1  ;;  %v135_v30 = vrot.slane %v134_v26, 1  ;;  %v161_v31 = vmax.f32 %v159_v23, %v160_v27 }
  0xd2   :  { %v636_v32 = vsub.f32 %v488_v4, %v195_v28  ;;  %v115_v33 = vmax.f32 %v113_v25, %v114_v29  ;;  %v136_v34 = vmax.f32 %v134_v26, %v135_v30  ;;  %v162_v35 = vrot.slane %v161_v31, 1 }
  0xd4   :  { %v197_v36 = vmul.f32 1.442695, %v636_v32  ;;  %v639_v37 = vsub.f32 %v99_v7, %v115_v33  ;;  %v641_v38 = vsub.f32 %v99_v7, %v136_v34  ;;  %v163_v39 = vmax.f32 %v161_v31, %v162_v35 }
  0xd6   :  { %530 = vpow2.f32 %v197_v36  ;;  %v117_v40 = vmul.f32 1.442695, %v639_v37  ;;  %v138_v41 = vmul.f32 1.442695, %v641_v38  ;;  %v645_v42 = vsub.f32 %v99_v7, %v163_v39 }
  0xd7   :  { %v647_v43 = vsub.f32 %v488_v4, %v163_v39 }
  0xd8   :  { %532 = vpow2.f32 %v117_v40  ;;  %v166_v44 = vmul.f32 1.442695, %v645_v42 }
  0xd9   :  { %534 = vpow2.f32 %v138_v41  ;;  %v168_v45 = vmul.f32 1.442695, %v647_v43  ;;  %v528_v41 = vld [vmem:[%s698_s2 + $0x20] sm:$0xff]  }
  0xda   :  { %536 = vpow2.f32 %v166_v44 }
  0xdb   :  { %538 = vpow2.f32 %v168_v45 }
  0xe3   :  { %v531_v46 = vpop.eup %530 }
  0xe4   :  { %v200_v47 = vrot.slane %v531_v46, 1 }
  0xe5   :  { %v533_v48 = vpop.eup %532 }
  0xe6   :  { %v535_v49 = vpop.eup %534  ;;  %v202_v50 = vsel %vm108_vm4, %v200_v47, 0.0  ;;  %v119_v51 = vsel %vm108_vm4, %v533_v48, 0.0 }
  0xe7   :  { %v537_v52 = vpop.eup %536  ;;  %v203_v53 = vrot.slane %v202_v50, 4  ;;  %v141_v54 = vrot.slane %v535_v49, 3  ;;  %v120_v55 = vrot.slane %v119_v51, 4 }
  0xe8   :  { %v539_v56 = vpop.eup %538  ;;  %v173_v57 = vrot.slane %v537_v52, 6 }
  0xe9   :  { %v204_v58 = vadd.f32 %v203_v53, %v202_v50  ;;  %v143_v59 = vsel %vm108_vm4, %v141_v54, 0.0  ;;  %v121_v60 = vadd.f32 %v120_v55, %v119_v51  ;;  %v174_v61 = vrot.slane %v539_v56, 6 }
  0xea   :  { %v144_v62 = vrot.slane %v143_v59, 4 }
  0xeb   :  { %v205_v63 = vrot.slane %v204_v58, 2  ;;  %v122_v0 = vrot.slane %v121_v60, 2  ;;  %v175_v1 = vsel %vm172_vm8, %v173_v57, %v174_v61 }
  0xec   :  { %v145_v2 = vadd.f32 %v144_v62, %v143_v59  ;;  %v177_v3 = vsel %vm108_vm4, %v175_v1, 0.0  ;;  %v594_v1 = vmov 0  }
  0xed   :  { %v206_v4 = vadd.f32 %v205_v63, %v204_v58  ;;  %v123_v5 = vadd.f32 %v122_v0, %v121_v60  ;;  %v178_v6 = vrot.slane %v177_v3, 4 }
  0xee   :  { %v146_v7 = vrot.slane %v145_v2, 2 }
  0xef   :  { %v207_v8 = vrot.slane %v206_v4, 1  ;;  %v124_v9 = vrot.slane %v123_v5, 1  ;;  %v179_v10 = vadd.f32 %v178_v6, %v177_v3 }
  0xf0   :  { %v147_v11 = vadd.f32 %v146_v7, %v145_v2  ;;  %v392_v2 = vsel %vm155_vm5, 65535, %v594_v1 }
  0xf1   :  { %v208_v12 = vadd.f32 %v207_v8, %v206_v4  ;;  %v125_v13 = vadd.f32 %v124_v9, %v123_v5  ;;  %v180_v14 = vrot.slane %v179_v10, 2 }
  0xf2   :  { %v148_v15 = vrot.slane %v147_v11, 1 }
  0xf3   :  { %v181_v16 = vadd.f32 %v180_v14, %v179_v10  ;;  %540 = vlog2.f32 %v125_v13 }
  0xf4   :  { %v149_v17 = vadd.f32 %v148_v15, %v147_v11  ;;  %542 = vlog2.f32 %v208_v12 }
  0xf5   :  { %v182_v18 = vrot.slane %v181_v16, 1 }
  0xf6   :  { %544 = vlog2.f32 %v149_v17 }
  0xf7   :  { %v183_v19 = vadd.f32 %v182_v18, %v181_v16 }
  0xf9   :  { %546 = vlog2.f32 %v183_v19 }
 0x100   :  { %v541_v20 = vpop.eup %540 }
 0x101   :  { %v543_v21 = vpop.eup %542  ;;  %v127_v23 = vmul.f32 0.6931472, %v541_v20 }
 0x102   :  { %v210_v25 = vmul.f32 0.6931472, %v543_v21 }
 0x103   :  { %v545_v22 = vpop.eup %544  ;;  %v128_v29 = vsub.f32 %v639_v37, %v127_v23  ;;  %v527_v37 = vld [vmem:[%s698_s2 + $0x18] sm:$0xff]   ;;  %v380_v23 = vld [vmem:[%s699_s3] sm:$0x3] }
 0x104   :  { %v151_v24 = vmul.f32 0.6931472, %v545_v22  ;;  %v211_v30 = vsub.f32 %v636_v32, %v210_v25  ;;  %v526_v32 = vld [vmem:[%s698_s2 + $0x10] sm:$0xff]  }
 0x106   :  { %v547_v26 = vpop.eup %546  ;;  %v152_v27 = vsub.f32 %v641_v38, %v151_v24  ;;  %v525_v38 = vld [vmem:[%s698_s2 + $0x8] sm:$0xff]  }
 0x107   :  { %v185_v28 = vmul.f32 0.6931472, %v547_v26 }
 0x108   :  { %v212_v34 = vsel %vm108_vm4, %v128_v29, %v152_v27 }
 0x109   :  { %v186_v31 = vsub.f32 %v645_v42, %v185_v28  ;;  %v187_v33 = vsub.f32 %v647_v43, %v185_v28  ;;  %v529_v42 = vld [vmem:[%s698_s2 + $0x28] ss:$0 sps:$4 sm:$0x11]   ;;  %v592_v43 = vmov 0.0  }
 0x10a   :  { %503 = vmatprep.subr.bf16.mxu0 %v592_v43  ;;  %515 = vmatprep.mubr.msk.bf16.mxu0 %vm593_vm10, %v592_v43 }
 0x10b   :  { %v214_v35 = vsel %vm213_vm9, %v212_v34, %v186_v31  ;;  %v215_v36 = vsel %vm155_vm5, %v187_v33, %v211_v30 }
 0x10c   :  { %v227_v39 = vpack.c.bf16 %v215_v36, %v214_v35 }
 0x10e   :  { %519 = vmatprep.subr.msk.bf16.mxu1 %vm213_vm9, %v227_v39  ;;  %v276_v40 = vsel %vm213_vm9, %v227_v39, 0 }
 0x10f   :  { %490 = vmatpush3.bf16.msra.mxu1 %v276_v40 }
 0x112   :  { %492 = vmatmul.mubr.msk.bf16.vlgmr.msra.gmra.mxu1 %vm256_vm2, %v525_v38 }
 0x113   :  { %495 = vmatprep.mubr.msk.bf16.mxu1 %vm256_vm2, %v526_v32 }
 0x11a   :  { %496 = vmatmul.mubr.msk.bf16.gmra.mxu1 %vm256_vm2, %v527_v37 }
 0x11b   :  { %499 = vmatprep.mubr.msk.bf16.mxu1 %vm256_vm2, %v528_v41 }
 0x122   :  { %500 = vmatmul.mubr.msk.bf16.gmra.mxu1 %vm256_vm2, %v529_v42 }
 0x1d2   :  { %v493_v44 = vpop.f32.mrf.mxu1 }
 0x1d3   :  { %v362_v3 = vmul.f32 1.442695, %v493_v44 }
 0x1d4   :  { %v312_v45 = vpop.f32.mrf.mxu1 }
 0x1d5   :  { %v358_v8 = vmul.f32 1.442695, %v312_v45 }
 0x1d6   :  { %v494_v46 = vpop.f32.mrf.mxu1 }
 0x1d7   :  { %v364_v63 = vmul.f32 1.442695, %v494_v46 }
 0x1d8   :  { %v315_v47 = vpop.f32.mrf.mxu1 }
 0x1d9   :  { %v360_v5 = vmul.f32 1.442695, %v315_v47 }
 0x1da   :  { %v497_v48 = vpop.f32.mrf.mxu1 }
 0x1db   :  { %v370_v60 = vmul.f32 1.442695, %v497_v48 }
 0x1dc   :  { %v328_v49 = vpop.f32.mrf.mxu1 }
 0x1dd   :  { %v366_v62 = vmul.f32 1.442695, %v328_v49 }
 0x1de   :  { %v498_v50 = vpop.f32.mrf.mxu1 }
 0x1df   :  { %v372_v58 = vmul.f32 1.442695, %v498_v50 }
 0x1e0   :  { %v331_v51 = vpop.f32.mrf.mxu1 }
 0x1e1   :  { %v368_v61 = vmul.f32 1.442695, %v331_v51 }
 0x1e2   :  { %v501_v52 = vpop.f32.mrf.mxu1 }
 0x1e3   :  { %v378_v53 = vmul.f32 1.442695, %v501_v52 }
 0x1e4   :  { %v344_v54 = vpop.f32.mrf.mxu1 }
 0x1e5   :  { %548 = vpow2.f32 %v378_v53  ;;  %v374_v55 = vmul.f32 1.442695, %v344_v54 }
 0x1e6   :  { %v502_v56 = vpop.f32.mrf.mxu1 }
 0x1e7   :  { %550 = vpow2.f32 %v374_v55 }
 0x1e8   :  { %v347_v57 = vpop.f32.mrf.mxu1 }
 0x1e9   :  { %v376_v59 = vmul.f32 1.442695, %v347_v57 }
 0x1eb   :  { %552 = vpow2.f32 %v376_v59 }
 0x1ec   :  { %554 = vpow2.f32 %v372_v58 }
 0x1ed   :  { %556 = vpow2.f32 %v370_v60 }
 0x1ee   :  { %558 = vpow2.f32 %v368_v61 }
 0x1ef   :  { %560 = vpow2.f32 %v366_v62 }
 0x1f0   :  { %562 = vpow2.f32 %v364_v63 }
 0x1f1   :  { %564 = vpow2.f32 %v362_v3 }
 0x1f2   :  { %v549_v0 = vpop.eup %548  ;;  %566 = vpow2.f32 %v360_v5 }
 0x1f3   :  { %v386_v4 = vpack.c.bf16 %v549_v0, %v549_v0  ;;  %568 = vpow2.f32 %v358_v8 }
 0x1f4   :  { %v551_v7 = vpop.eup %550 }
 0x1f5   :  { %v394_v6 = vand.u32 %v392_v2, %v386_v4 }
 0x1f7   :  { %504 = vmatpush3.bf16.msra.mxu0 %v394_v6 }
 0x1f8   :  { %v553_v9 = vpop.eup %552  ;;  %505 = vmatprep.subr.bf16.mxu0 %v592_v43 }
 0x1f9   :  { %v385_v10 = vpack.c.bf16 %v553_v9, %v551_v7  ;;  %v555_v11 = vpop.eup %554 }
 0x1fa   :  { %v557_v12 = vpop.eup %556 }
 0x1fb   :  { %506 = vmatpush3.bf16.msra.mxu0 %v385_v10  ;;  %v384_v13 = vpack.c.bf16 %v555_v11, %v557_v12  ;;  %v559_v14 = vpop.eup %558 }
 0x1fc   :  { %507 = vmatprep.subr.bf16.mxu0 %v592_v43  ;;  %v561_v15 = vpop.eup %560 }
 0x1fd   :  { %v383_v16 = vpack.c.bf16 %v559_v14, %v561_v15  ;;  %v563_v17 = vpop.eup %562 }
 0x1fe   :  { %v565_v18 = vpop.eup %564 }
 0x1ff   :  { %508 = vmatpush3.bf16.msra.mxu0 %v384_v13  ;;  %v382_v19 = vpack.c.bf16 %v563_v17, %v565_v18  ;;  %v567_v20 = vpop.eup %566 }
 0x200   :  { %509 = vmatprep.subr.bf16.mxu0 %v592_v43  ;;  %v569_v21 = vpop.eup %568 }
 0x201   :  { %v381_v22 = vpack.c.bf16 %v567_v20, %v569_v21 }
 0x203   :  { %510 = vmatpush3.bf16.msra.mxu0 %v383_v16 }
 0x204   :  { %511 = vmatprep.subr.bf16.mxu0 %v592_v43 }
 0x207   :  { %512 = vmatpush3.bf16.msra.mxu0 %v382_v19 }
 0x208   :  { %513 = vmatprep.subr.bf16.mxu0 %v592_v43 }
 0x20b   :  { %514 = vmatpush3.bf16.msra.mxu0 %v381_v22 }
 0x20e   :  { %516 = vmatmul.mubr.msk.bf16.vlgmr.msra.gmra.mxu0 %vm387_vm11, %v380_v23 }
 0x2ce   :  { %v430_v24 = vpop.f32.mrf.mxu0 }
 0x2cf   :  { %436 = vst [vmem:[#allocation2] sm:$0xf] %v430_v24 }
 0x2d0   :  { %v517_v25 = vpop.f32.mrf.mxu0 }
 0x2d1   :  { %581 = shalt.err (!%p578_p4)
}
 0x2d2   :  { %446 = dma.vmem_to_hbm [thread:$0]  %s444_s7, 64, %s700_s4, [#allocation3]   ;;  %v433_v26 = vpop.f32.mrf.mxu0 }
 0x2d4   :  { %v518_v27 = vpop.f32.mrf.mxu0 }
 0x2d5   :  { %590 = dma.done.wait [#allocation3], 64  }
 0x2d6   :  { %591 = vsyncadd [#allocation3], 4294967232 }
 0x2d7   :  { %450 = vsyncpa [#allocation3], 1 }

</bundles_post_ra>
